<compile_context>
chip_gen: v7x
topology: tpu7x:2x2x1
jax: 0.10.0
libtpu: 0.0.40
codegen_flags: <defaults>
</compile_context>

<pallas_src>
import jax
import jax.numpy as jnp
from jax import lax
from jax.experimental import pallas as pl
from jax.experimental.pallas import tpu as pltpu

PMASK_SLOPE = 5.0
DESIRED_SPARSITY = 0.125
SAMPLE_SLOPE = 10.0  # only used in the PyTorch backward; unused in forward


def _pick_row_tile(h, max_rows=512):
    """Row-tile size: full H when small, else a multiple-of-8 divisor of H."""
    if h <= max_rows:
        return h
    for t in range(max_rows - max_rows % 8, 7, -8):
        if h % t == 0:
            return t
    return h


# ---------------------------------------------------------------------------
# Kernel 1: ProbMask + RescaleProbMap (fused; weight is small -> single block).
# ---------------------------------------------------------------------------
def _probmask_rescale_kernel(w_ref, o_ref):
    w = w_ref[...]
    p1 = 1.0 / (1.0 + jnp.exp(-PMASK_SLOPE * w))      # sigmoid(slope * w)
    xbar = jnp.mean(p1, keepdims=True)                # (1, 1)
    r = DESIRED_SPARSITY / xbar
    beta = (1.0 - DESIRED_SPARSITY) / (1.0 - xbar)
    le = (r < 1.0).astype(p1.dtype)
    o_ref[...] = le * (p1 * r) + (1.0 - le) * (1.0 - (1.0 - p1) * beta)


def _probmask_rescale(weight_hw):
    h, w = weight_hw.shape
    return pl.pallas_call(
        _probmask_rescale_kernel,
        out_shape=jax.ShapeDtypeStruct((h, w), jnp.float32),
    )(weight_hw)


# ---------------------------------------------------------------------------
# Kernel 2: ThresholdRandomMaskSigmoidV1 forward compare: mask = (p2 > u).float()
# ---------------------------------------------------------------------------
def _threshold_kernel(p_ref, u_ref, o_ref):
    # p_ref: (TH, W) prob-map tile (shared across batch); u_ref/o_ref: (1,1,TH,W)
    o_ref[...] = (p_ref[...] > u_ref[...]).astype(o_ref.dtype)


def _threshold_compare(p2_hw, u_b1hw):
    b, _, h, w = u_b1hw.shape
    th = _pick_row_tile(h)
    grid = (b, h // th)
    return pl.pallas_call(
        _threshold_kernel,
        out_shape=jax.ShapeDtypeStruct((b, 1, h, w), jnp.float32),
        grid=grid,
        in_specs=[
            pl.BlockSpec((th, w), lambda bi, hi: (hi, 0)),
            pl.BlockSpec((1, 1, th, w), lambda bi, hi: (bi, 0, hi, 0)),
        ],
        out_specs=pl.BlockSpec((1, 1, th, w), lambda bi, hi: (bi, 0, hi, 0)),
        compiler_params=pltpu.CompilerParams(
            dimension_semantics=("parallel", "parallel")),
    )(p2_hw, u_b1hw)


def _threshold_random_mask(p2_hw, key, batch, atol=1e-3, rtol=1e-5, max_draws=1000):
    """Rejection loop of ThresholdRandomMaskSigmoidV1.forward."""
    h, w = p2_hw.shape
    target = jnp.mean(p2_hw)  # equals mean of the batch-replicated prob map

    def draw(i):
        u = jax.random.uniform(jax.random.fold_in(key, i), (batch, 1, h, w),
                               dtype=jnp.float32)
        return _threshold_compare(p2_hw, u)

    def is_close(m):
        return jnp.abs(jnp.mean(m) - target) <= atol + rtol * jnp.abs(target)

    def cond_fn(state):
        i, m = state
        return jnp.logical_and(jnp.logical_not(is_close(m)), i <= max_draws)

    def body_fn(state):
        i, _ = state
        return i + 1, draw(i + 1)

    i0 = jnp.array(0, dtype=jnp.int32)
    _, mask = lax.while_loop(cond_fn, body_fn, (i0, draw(i0)))
    return mask


# ---------------------------------------------------------------------------
# Kernel 3: UnderSample  (u_k = fft * mask, mask broadcast over re/im channels)
# ---------------------------------------------------------------------------
def _undersample_kernel(f_ref, m_ref, o_ref):
    # f_ref/o_ref: (1, 2, TH, W); m_ref: (1, 1, TH, W)
    o_ref[...] = f_ref[...] * m_ref[...]


def _undersample(fft_ri, mask):
    b, c, h, w = fft_ri.shape  # c == 2
    th = _pick_row_tile(h)
    grid = (b, h // th)
    return pl.pallas_call(
        _undersample_kernel,
        out_shape=jax.ShapeDtypeStruct((b, c, h, w), jnp.float32),
        grid=grid,
        in_specs=[
            pl.BlockSpec((1, c, th, w), lambda bi, hi: (bi, 0, hi, 0)),
            pl.BlockSpec((1, 1, th, w), lambda bi, hi: (bi, 0, hi, 0)),
        ],
        out_specs=pl.BlockSpec((1, c, th, w), lambda bi, hi: (bi, 0, hi, 0)),
        compiler_params=pltpu.CompilerParams(
            dimension_semantics=("parallel", "parallel")),
    )(fft_ri, mask)


# ---------------------------------------------------------------------------
# Kernel 4: ComplexAbs  (sqrt(re^2 + im^2))
# ---------------------------------------------------------------------------
def _complex_abs_kernel(x_ref, o_ref):
    v = x_ref[...]                 # (1, 2, TH, W)
    re = v[:, 0:1, :, :]
    im = v[:, 1:2, :, :]
    o_ref[...] = jnp.sqrt(re * re + im * im)


def _complex_abs(x_ri):
    b, c, h, w = x_ri.shape
    th = _pick_row_tile(h)
    grid = (b, h // th)
    return pl.pallas_call(
        _complex_abs_kernel,
        out_shape=jax.ShapeDtypeStruct((b, 1, h, w), jnp.float32),
        grid=grid,
        in_specs=[pl.BlockSpec((1, c, th, w), lambda bi, hi: (bi, 0, hi, 0))],
        out_specs=pl.BlockSpec((1, 1, th, w), lambda bi, hi: (bi, 0, hi, 0)),
        compiler_params=pltpu.CompilerParams(
            dimension_semantics=("parallel", "parallel")),
    )(x_ri)


# ---------------------------------------------------------------------------
# Full Mask_Oneshot_Layer forward
# ---------------------------------------------------------------------------
def mask_oneshot_forward(x, weight_hw, key):
    """x: (B, 1, H, W) float32; weight_hw: (H, W) ProbMask logit weights."""
    b, c, h, w = x.shape
    assert c == 1, "Mask_Oneshot_Layer expects single-channel real input"

    # 1) ProbMask + RescaleProbMap (fused Pallas kernel on the (H, W) weight).
    p2 = _probmask_rescale(weight_hw)                                     # (H, W)

    # 2) Threshold with rejection loop (Pallas compare kernel in a while_loop).
    mask = _threshold_random_mask(p2, key, b)                             # (B,1,H,W)

    # 3) FFT: torch.rfft(x, 2, onesided=False) -> squeeze -> (re, im) channels.
    xc = jnp.fft.fft2(x[:, 0, :, :])
    fft_ri = jnp.stack([jnp.real(xc), jnp.imag(xc)], axis=1).astype(jnp.float32)

    # 4) UnderSample (Pallas).
    u_k = _undersample(fft_ri, mask)                                      # (B,2,H,W)

    # 5) iFFT: torch.ifft over the spatial dims.
    yc = jnp.fft.ifft2(u_k[:, 0, :, :] + 1j * u_k[:, 1, :, :])
    uifft = jnp.stack([jnp.real(yc), jnp.imag(yc)], axis=1).astype(jnp.float32)

    # 6) ComplexAbs (Pallas).
    complex_abs = _complex_abs(uifft)                                     # (B,1,H,W)

    return uifft, complex_abs, mask, fft_ri, u_k


if __name__ == "__main__":
    root = jax.random.PRNGKey(0)
    kx, kw, kt = jax.random.split(root, 3)

    B, C, H, W = 2, 1, 16, 16  # small shapes; module default is inputs_size=[256, 256]
    x = jax.random.normal(kx, (B, C, H, W), dtype=jnp.float32)

    # ProbMask.reset_parameters(): w ~ U(eps, 1-eps); w = -log(1/w - 1) / slope
    eps = 1e-4
    w0 = jax.random.uniform(kw, (H, W), dtype=jnp.float32,
                            minval=eps, maxval=1.0 - eps)
    weight_hw = -jnp.log(1.0 / w0 - 1.0) / PMASK_SLOPE

    fwd = jax.jit(mask_oneshot_forward)
    uifft, complex_abs, mask, fft_ri, u_k = jax.block_until_ready(
        fwd(x, weight_hw, kt))

    assert uifft.shape == (B, 2, H, W) and uifft.dtype == jnp.float32
    assert complex_abs.shape == (B, 1, H, W)
    assert mask.shape == (B, 1, H, W)
    assert fft_ri.shape == (B, 2, H, W)
    assert u_k.shape == (B, 2, H, W)
    # mask is binary, u_k is the mask-gated fft, abs is consistent with uifft.
    assert bool(jnp.all((mask == 0.0) | (mask == 1.0)))
    assert bool(jnp.allclose(u_k, fft_ri * mask, atol=1e-4))
    recon = jnp.sqrt(uifft[:, 0:1] ** 2 + uifft[:, 1:2] ** 2)
    assert bool(jnp.allclose(complex_abs, recon, atol=1e-4))

    print("KERNEL_OK")
</pallas_src>

<mosaic_0001>
module attributes {stable_mosaic.version = 11 : i64} {
  func.func @_probmask_rescale_kernel(%arg0: memref<16x16xf32, #tpu.memory_space<vmem>>, %arg1: memref<16x16xf32, #tpu.memory_space<vmem>>) attributes {dimension_semantics = [], scalar_prefetch = 0 : i64, scratch_operands = 0 : i64, tpu.core_type = #tpu.core_type<tc>} {
    %c0 = arith.constant 0 : index
    %c0_0 = arith.constant 0 : index
    %0 = vector.load %arg0[%c0, %c0_0] : memref<16x16xf32, #tpu.memory_space<vmem>>, vector<16x16xf32>
    %cst = arith.constant -5.000000e+00 : f32
    %1 = vector.broadcast %cst : f32 to vector<16x16xf32>
    %2 = arith.mulf %1, %0 : vector<16x16xf32>
    %3 = math.exp %2 : vector<16x16xf32>
    %cst_1 = arith.constant 1.000000e+00 : f32
    %4 = vector.broadcast %cst_1 : f32 to vector<16x16xf32>
    %5 = arith.addf %4, %3 : vector<16x16xf32>
    %cst_2 = arith.constant 1.000000e+00 : f32
    %6 = vector.broadcast %cst_2 : f32 to vector<16x16xf32>
    %7 = arith.divf %6, %5 : vector<16x16xf32>
    %8 = vector.shape_cast %7 : vector<16x16xf32> to vector<1x16x16xf32>
    %cst_3 = arith.constant dense<0.000000e+00> : vector<1xf32>
    %9 = vector.multi_reduction <add>, %8, %cst_3 [1, 2] : vector<1x16x16xf32> to vector<1xf32>
    %10 = vector.shape_cast %9 : vector<1xf32> to vector<1x1x1xf32>
    %11 = vector.extract %10[0, 0, 0] : f32 from vector<1x1x1xf32>
    %12 = vector.broadcast %11 : f32 to vector<1x1xf32>
    %cst_4 = arith.constant 2.560000e+02 : f32
    %13 = vector.broadcast %cst_4 : f32 to vector<1x1xf32>
    %14 = arith.divf %12, %13 : vector<1x1xf32>
    %cst_5 = arith.constant 1.250000e-01 : f32
    %15 = vector.broadcast %cst_5 : f32 to vector<1x1xf32>
    %16 = arith.divf %15, %14 : vector<1x1xf32>
    %cst_6 = arith.constant 1.000000e+00 : f32
    %17 = vector.broadcast %cst_6 : f32 to vector<1x1xf32>
    %18 = arith.subf %17, %14 : vector<1x1xf32>
    %cst_7 = arith.constant 8.750000e-01 : f32
    %19 = vector.broadcast %cst_7 : f32 to vector<1x1xf32>
    %20 = arith.divf %19, %18 : vector<1x1xf32>
    %cst_8 = arith.constant 1.000000e+00 : f32
    %21 = vector.broadcast %cst_8 : f32 to vector<1x1xf32>
    %22 = arith.cmpf olt, %16, %21 : vector<1x1xf32>
    %23 = arith.extui %22 : vector<1x1xi1> to vector<1x1xi32>
    %24 = arith.sitofp %23 : vector<1x1xi32> to vector<1x1xf32>
    %25 = vector.broadcast %16 : vector<1x1xf32> to vector<16x16xf32>
    %26 = arith.mulf %7, %25 : vector<16x16xf32>
    %27 = vector.broadcast %24 : vector<1x1xf32> to vector<16x16xf32>
    %28 = arith.mulf %27, %26 : vector<16x16xf32>
    %cst_9 = arith.constant 1.000000e+00 : f32
    %29 = vector.broadcast %cst_9 : f32 to vector<1x1xf32>
    %30 = arith.subf %29, %24 : vector<1x1xf32>
    %cst_10 = arith.constant 1.000000e+00 : f32
    %31 = vector.broadcast %cst_10 : f32 to vector<16x16xf32>
    %32 = arith.subf %31, %7 : vector<16x16xf32>
    %33 = vector.broadcast %20 : vector<1x1xf32> to vector<16x16xf32>
    %34 = arith.mulf %32, %33 : vector<16x16xf32>
    %cst_11 = arith.constant 1.000000e+00 : f32
    %35 = vector.broadcast %cst_11 : f32 to vector<16x16xf32>
    %36 = arith.subf %35, %34 : vector<16x16xf32>
    %37 = vector.broadcast %30 : vector<1x1xf32> to vector<16x16xf32>
    %38 = arith.mulf %37, %36 : vector<16x16xf32>
    %39 = arith.addf %28, %38 : vector<16x16xf32>
    %c0_12 = arith.constant 0 : index
    %c0_13 = arith.constant 0 : index
    %40 = vector.load %arg1[%c0_12, %c0_13] : memref<16x16xf32, #tpu.memory_space<vmem>>, vector<16x16xf32>
    tpu.vector_store %arg1[%c0_12, %c0_13], %39 {strides = array<i32>} : memref<16x16xf32, #tpu.memory_space<vmem>>, vector<16x16xf32>,
    return
  }
}

module attributes {stable_mosaic.version = 11 : i64} {
  func.func @_threshold_kernel(%arg0: i32, %arg1: i32, %arg2: memref<16x16xf32, #tpu.memory_space<vmem>>, %arg3: memref<1x1x16x16xf32, #tpu.memory_space<vmem>>, %arg4: memref<1x1x16x16xf32, #tpu.memory_space<vmem>>) attributes {dimension_semantics = [#tpu.dimension_semantics<parallel>, #tpu.dimension_semantics<parallel>], iteration_bounds = array<i64: 2, 1>, scalar_prefetch = 0 : i64, scratch_operands = 0 : i64, tpu.core_type = #tpu.core_type<tc>, window_params = [{transform_indices = @transform_0, window_bounds = array<i64: 16, 16>}, {transform_indices = @transform_1, window_bounds = array<i64: 1, 1, 16, 16>}, {transform_indices = @transform_2, window_bounds = array<i64: 1, 1, 16, 16>}]} {
    %c0 = arith.constant 0 : index
    %c0_0 = arith.constant 0 : index
    %0 = vector.load %arg2[%c0, %c0_0] : memref<16x16xf32, #tpu.memory_space<vmem>>, vector<16x16xf32>
    %c0_1 = arith.constant 0 : index
    %c0_2 = arith.constant 0 : index
    %c0_3 = arith.constant 0 : index
    %c0_4 = arith.constant 0 : index
    %1 = vector.load %arg3[%c0_1, %c0_2, %c0_3, %c0_4] : memref<1x1x16x16xf32, #tpu.memory_space<vmem>>, vector<1x1x16x16xf32>
    %2 = vector.shape_cast %0 : vector<16x16xf32> to vector<1x1x16x16xf32>
    %3 = arith.cmpf ogt, %2, %1 : vector<1x1x16x16xf32>
    %4 = arith.extui %3 : vector<1x1x16x16xi1> to vector<1x1x16x16xi32>
    %5 = arith.sitofp %4 : vector<1x1x16x16xi32> to vector<1x1x16x16xf32>
    %c0_5 = arith.constant 0 : index
    %c0_6 = arith.constant 0 : index
    %c0_7 = arith.constant 0 : index
    %c0_8 = arith.constant 0 : index
    %6 = vector.load %arg4[%c0_5, %c0_6, %c0_7, %c0_8] : memref<1x1x16x16xf32, #tpu.memory_space<vmem>>, vector<1x1x16x16xf32>
    tpu.vector_store %arg4[%c0_5, %c0_6, %c0_7, %c0_8], %5 {strides = array<i32>} : memref<1x1x16x16xf32, #tpu.memory_space<vmem>>, vector<1x1x16x16xf32>,
    return
  }
  func.func @transform_0(%arg0: i32, %arg1: i32) -> (i32, i32) {
    %c0_i32 = arith.constant 0 : i32
    %c0_i32_0 = arith.constant 0 : i32
    return %arg1, %c0_i32 : i32, i32
  }
  func.func @transform_1(%arg0: i32, %arg1: i32) -> (i32, i32, i32, i32) {
    %c0_i32 = arith.constant 0 : i32
    %c0_i32_0 = arith.constant 0 : i32
    %c0_i32_1 = arith.constant 0 : i32
    return %arg0, %c0_i32, %arg1, %c0_i32_0 : i32, i32, i32, i32
  }
  func.func @transform_2(%arg0: i32, %arg1: i32) -> (i32, i32, i32, i32) {
    %c0_i32 = arith.constant 0 : i32
    %c0_i32_0 = arith.constant 0 : i32
    %c0_i32_1 = arith.constant 0 : i32
    return %arg0, %c0_i32, %arg1, %c0_i32_0 : i32, i32, i32, i32
  }
}

module attributes {stable_mosaic.version = 11 : i64} {
  func.func @_undersample_kernel(%arg0: i32, %arg1: i32, %arg2: memref<1x2x16x16xf32, #tpu.memory_space<vmem>>, %arg3: memref<1x1x16x16xf32, #tpu.memory_space<vmem>>, %arg4: memref<1x2x16x16xf32, #tpu.memory_space<vmem>>) attributes {dimension_semantics = [#tpu.dimension_semantics<parallel>, #tpu.dimension_semantics<parallel>], iteration_bounds = array<i64: 2, 1>, scalar_prefetch = 0 : i64, scratch_operands = 0 : i64, tpu.core_type = #tpu.core_type<tc>, window_params = [{transform_indices = @transform_0, window_bounds = array<i64: 1, 2, 16, 16>}, {transform_indices = @transform_1, window_bounds = array<i64: 1, 1, 16, 16>}, {transform_indices = @transform_2, window_bounds = array<i64: 1, 2, 16, 16>}]} {
    %c0 = arith.constant 0 : index
    %c0_0 = arith.constant 0 : index
    %c0_1 = arith.constant 0 : index
    %c0_2 = arith.constant 0 : index
    %0 = vector.load %arg2[%c0, %c0_0, %c0_1, %c0_2] : memref<1x2x16x16xf32, #tpu.memory_space<vmem>>, vector<1x2x16x16xf32>
    %c0_3 = arith.constant 0 : index
    %c0_4 = arith.constant 0 : index
    %c0_5 = arith.constant 0 : index
    %c0_6 = arith.constant 0 : index
    %1 = vector.load %arg3[%c0_3, %c0_4, %c0_5, %c0_6] : memref<1x1x16x16xf32, #tpu.memory_space<vmem>>, vector<1x1x16x16xf32>
    %2 = vector.broadcast %1 : vector<1x1x16x16xf32> to vector<1x2x16x16xf32>
    %3 = arith.mulf %0, %2 : vector<1x2x16x16xf32>
    %c0_7 = arith.constant 0 : index
    %c0_8 = arith.constant 0 : index
    %c0_9 = arith.constant 0 : index
    %c0_10 = arith.constant 0 : index
    %4 = vector.load %arg4[%c0_7, %c0_8, %c0_9, %c0_10] : memref<1x2x16x16xf32, #tpu.memory_space<vmem>>, vector<1x2x16x16xf32>
    tpu.vector_store %arg4[%c0_7, %c0_8, %c0_9, %c0_10], %3 {strides = array<i32>} : memref<1x2x16x16xf32, #tpu.memory_space<vmem>>, vector<1x2x16x16xf32>,
    return
  }
  func.func @transform_0(%arg0: i32, %arg1: i32) -> (i32, i32, i32, i32) {
    %c0_i32 = arith.constant 0 : i32
    %c0_i32_0 = arith.constant 0 : i32
    %c0_i32_1 = arith.constant 0 : i32
    return %arg0, %c0_i32, %arg1, %c0_i32_0 : i32, i32, i32, i32
  }
  func.func @transform_1(%arg0: i32, %arg1: i32) -> (i32, i32, i32, i32) {
    %c0_i32 = arith.constant 0 : i32
    %c0_i32_0 = arith.constant 0 : i32
    %c0_i32_1 = arith.constant 0 : i32
    return %arg0, %c0_i32, %arg1, %c0_i32_0 : i32, i32, i32, i32
  }
  func.func @transform_2(%arg0: i32, %arg1: i32) -> (i32, i32, i32, i32) {
    %c0_i32 = arith.constant 0 : i32
    %c0_i32_0 = arith.constant 0 : i32
    %c0_i32_1 = arith.constant 0 : i32
    return %arg0, %c0_i32, %arg1, %c0_i32_0 : i32, i32, i32, i32
  }
}

module attributes {stable_mosaic.version = 11 : i64} {
  func.func @_complex_abs_kernel(%arg0: i32, %arg1: i32, %arg2: memref<1x2x16x16xf32, #tpu.memory_space<vmem>>, %arg3: memref<1x1x16x16xf32, #tpu.memory_space<vmem>>) attributes {dimension_semantics = [#tpu.dimension_semantics<parallel>, #tpu.dimension_semantics<parallel>], iteration_bounds = array<i64: 2, 1>, scalar_prefetch = 0 : i64, scratch_operands = 0 : i64, tpu.core_type = #tpu.core_type<tc>, window_params = [{transform_indices = @transform_0, window_bounds = array<i64: 1, 2, 16, 16>}, {transform_indices = @transform_1, window_bounds = array<i64: 1, 1, 16, 16>}]} {
    %c0 = arith.constant 0 : index
    %c0_0 = arith.constant 0 : index
    %c0_1 = arith.constant 0 : index
    %c0_2 = arith.constant 0 : index
    %0 = vector.load %arg2[%c0, %c0_0, %c0_1, %c0_2] : memref<1x2x16x16xf32, #tpu.memory_space<vmem>>, vector<1x2x16x16xf32>
    %1 = vector.extract_strided_slice %0 {offsets = [0, 0, 0, 0], sizes = [1, 1, 16, 16], strides = [1, 1, 1, 1]} : vector<1x2x16x16xf32> to vector<1x1x16x16xf32>
    %2 = vector.extract_strided_slice %0 {offsets = [0, 1, 0, 0], sizes = [1, 1, 16, 16], strides = [1, 1, 1, 1]} : vector<1x2x16x16xf32> to vector<1x1x16x16xf32>
    %3 = arith.mulf %1, %1 : vector<1x1x16x16xf32>
    %4 = arith.mulf %2, %2 : vector<1x1x16x16xf32>
    %5 = arith.addf %3, %4 : vector<1x1x16x16xf32>
    %6 = math.sqrt %5 : vector<1x1x16x16xf32>
    %c0_3 = arith.constant 0 : index
    %c0_4 = arith.constant 0 : index
    %c0_5 = arith.constant 0 : index
    %c0_6 = arith.constant 0 : index
    %7 = vector.load %arg3[%c0_3, %c0_4, %c0_5, %c0_6] : memref<1x1x16x16xf32, #tpu.memory_space<vmem>>, vector<1x1x16x16xf32>
    tpu.vector_store %arg3[%c0_3, %c0_4, %c0_5, %c0_6], %6 {strides = array<i32>} : memref<1x1x16x16xf32, #tpu.memory_space<vmem>>, vector<1x1x16x16xf32>,
    return
  }
  func.func @transform_0(%arg0: i32, %arg1: i32) -> (i32, i32, i32, i32) {
    %c0_i32 = arith.constant 0 : i32
    %c0_i32_0 = arith.constant 0 : i32
    %c0_i32_1 = arith.constant 0 : i32
    return %arg0, %c0_i32, %arg1, %c0_i32_0 : i32, i32, i32, i32
  }
  func.func @transform_1(%arg0: i32, %arg1: i32) -> (i32, i32, i32, i32) {
    %c0_i32 = arith.constant 0 : i32
    %c0_i32_0 = arith.constant 0 : i32
    %c0_i32_1 = arith.constant 0 : i32
    return %arg0, %c0_i32, %arg1, %c0_i32_0 : i32, i32, i32, i32
  }
}

</mosaic_0001>

<bundles_post_ra>
// kernel: mask_oneshot_forward.5
= control target key start
LH: loop header
LB: loop body
LE: loop exit
PB: predicated region body
PF: predicated region fallthrough
CT: control target
= control target key end

     0   :  { %7 = vsyncpa [#allocation3], 0  ;;  %s614_s0 = inlined_call_operand.vmem [shape: f32[16,16], index: 0, kind: input, shape index: {}]   ;;  %s615_s1 = inlined_call_operand.vmem [shape: f32[2,1,16,16], index: 1, kind: input, shape index: {}]   ;;  %s616_s2 = inlined_call_operand.hbm [shape: f32[2,1,16,16], index: 2, kind: output, shape index: {}]  }
   0x1   :  { %9 = vsyncpa [#allocation3 + $0x1], 0  ;;  %s493_s9 = smov 0   ;;  %s495_s10 = smov 0  }
   0x2   :  { %s497_s11 = smov 0   ;;  %s499_s12 = smov 0  }
   0x3   :  { %s501_s13 = smov 0   ;;  %s503_s14 = smov 0  }
   0x4 LB: > { %s318_s15 = sadd.s32 4294967295, %s472_s14   ;;  %s319_s16 = sadd.s32 4294967294, %s472_s14   ;;  %s472_s14 = sphi %s503_s14, %s15_s14   ;;  %s468_s13 = sphi %s501_s13, %s623_s13   ;;  %s464_s12 = sphi %s499_s12, %s622_s12   ;;  %s460_s11 = sphi %s497_s11, %s621_s11   ;;  %s456_s10 = sphi %s495_s10, %s620_s10   ;;  %s452_s9 = sphi %s493_s9, %s619_s9  }
   0x5   : > { %s27_s17 = sadd.s32 1, %s468_s13  ;;  %s90_s18 = sadd.s32 1, %s460_s11 }
   0x6   : > { %p29_p0 = scmp.ge.s32.totalorder %s27_s17, 2  ;;  %p100_p1 = scmp.ne.s32.totalorder %s460_s11, %s456_s10 }
   0x7   : > { %p101_p2 = scmp.eq.s32.totalorder %s318_s15, 1  ;;  %p106_p3 = scmp.ne.s32.totalorder %s456_s10, %s452_s9 }
   0x8   : > { %s625_s17 = smov (%p29_p0, %s27_s17), 0  ;;  %p107_p5 = scmp.eq.s32.totalorder %s319_s16, 1 }
   0x9   : > { %p533_p4 = por %p101_p2, %p100_p1  ;;  %s85_s20 = ssub.s32 %s468_s13, %s625_s17 }
   0xa   : > { %p323_p6 = scmp.ge.s32.totalorder %s472_s14, 1  ;;  %p88_p7 = scmp.eq.s32.totalorder %s85_s20, 0 }
   0xb   : > { %p540_p8 = por %p107_p5, %p106_p3  ;;  %p147_p9 = scmp.lt.s32.totalorder %s472_s14, 3 }
   0xc   : > { %s546_s22 = scalar_select %p88_p7, %s460_s11, %s90_s18  }
   0xd   : > { %p148_p10 = pnand %p323_p6, %p147_p9 }
   0xe   : > { %s175_s23 = sand.u32 (!%p148_p10), 1, %s456_s10   ;;  %p185_p11 = scmp.lt.s32.totalorder (!%p148_p10), %s464_s12, 1  ;;  %v195_v0 = vld [vmem:[%s614_s0] sm:$0xff] (!%p148_p10)  ;;  %v196_v1 = vld [vmem:[%s614_s0 + $0x8] sm:$0xff] (!%p148_p10)  ;;  %vm205_vm0 = vcmask (!%p148_p10), 130048   ;;  %v474_v4 = vmov (!%p148_p10), 0.0  }
   0xf   : > { %151 = sbr.rel (%p148_p10) target bundleno = 46 (0x2e), region = 28  ;;  %s324_s24 = sshll.u32 (!%p148_p10), %s175_s23, 4 }
  0x10   : > { %s177_s26 = scalar_lea.vmem (!%p148_p10), [#allocation2], %s324_s24  ;;  %s335_s28 = sshll.u32 (!%p148_p10), %s464_s12, 8 }
  0x11   : > { %s224_s27 = sshll.u32 (!%p148_p10), %s177_s26, 4  ;;  %s566_s16 = scalar_lea.hbm (!%p148_p10), %s616_s2, %s335_s28  ;;  %s561_s27 = int_to_ptr.vmem [resolvable:$true] %s224_s27 }
  0x12   : > { %s568_s18 = scalar_lea.sflag (!%p148_p10), [#allocation3], %s175_s23  ;;  %s394_s20 = scalar_lea.vmem (!%p148_p10), %s561_s27, 256 }
  0x13   : > { %p395_p12 = scmp.ne.s32.totalorder (!%p148_p10), %s561_s27, %s394_s20  ;;  %s475_s24 = smov (!%p148_p10), [#allocation2]  }
  0x15   : > { %p396_p13 = pnand (!%p148_p10), %p395_p12, %p533_p4 }
  0x16   : > { %s186_s25 = scalar_select %p185_p11, %s464_s12, 1 }
  0x17   : > { %p397_p0 = pneg %p396_p13 }
  0x18   : > { %s334_s29 = sshll.u32 %s186_s25, 4  ;;  %s398_s25 = sshll.u32 %s475_s24, 4  ;;  %s399_s25 = int_to_ptr.vmem [resolvable:$false] %s398_s25 }
  0x19   : > { %s192_s8 = scalar_lea.vmem %s615_s1, %s334_s29  ;;  %s400_s28 = scalar_lea.vmem %s399_s25, 512 }
  0x1a   : > { %v197_v2 = vld [vmem:[%s192_s8] sm:$0xff]  ;;  %v198_v3 = vld [vmem:[%s192_s8 + $0x8] sm:$0xff]  ;;  %p401_p1 = scmp.lt.s32.totalorder %s561_s27, %s399_s25  ;;  %p402_p2 = scmp.lt.s32.totalorder %s400_s28, %s394_s20 }
  0x1b   : > { %vm199_vm1 = vcmp.gt.f32.partialorder %v195_v0, %v197_v2  ;;  %vm200_vm2 = vcmp.gt.f32.partialorder %v196_v1, %v198_v3 }
  0x1c   : > { %v327_v5 = vsel %vm199_vm1, 1.0, %v474_v4  ;;  %v328_v6 = vsel %vm200_vm2, 1.0, %v474_v4  ;;  %p403_p3 = por %p402_p2, %p401_p1 }
  0x1d   : > { %206 = vst.msk [vmem:[%s177_s26] sm:$0xff] %vm205_vm0, %v327_v5  ;;  %207 = vst.msk [vmem:[%s177_s26 + $0x8] sm:$0xff] %vm205_vm0, %v328_v6 }
  0x1e   : > { %p404_p5 = pnand %p403_p3, %p397_p0 }
  0x20   : > { %407 = shalt.err (!%p404_p5)
}
  0x21   : > { %s408_s23 = scalar_lea.hbm %s566_s16, 256  ;;  %s412_s30 = scalar_lea.hbm %s616_s2, 512 }
  0x22   : > { %p409_p6 = scmp.ne.s32.totalorder %s566_s16, %s408_s23  ;;  %p413_p10 = scmp.lt.u32.totalorder %s566_s16, %s616_s2 }
  0x23   : > { %p414_p11 = scmp.lt.u32.totalorder %s412_s30, %s408_s23  ;;  %p416_p13 = scmp.lt.u32.totalorder %s408_s23, %s566_s16 }
  0x24   : > { %p410_p7 = pnand %p409_p6, %p533_p4 }
  0x25   : > { %p415_p12 = por %p414_p11, %p413_p10 }
  0x26   : > { %p411_p9 = pneg %p410_p7 }
  0x27   : > { %p417_p0 = por %p416_p13, %p415_p12 }
  0x29   : > { %p418_p1 = pnand %p417_p0, %p411_p9 }
  0x2b   : > { %421 = shalt.err (!%p418_p1)
}
  0x2c   : > { %s476_s5 = smov 128   ;;  %s477_s6 = smov 8  }
  0x2d   : > { %336 = dma.vmem_to_hbm [thread:$0]  (%p533_p4), %s561_s27, 256, %s566_s16, %s568_s18, %s476_s5, %s476_s5, %s477_s6  }
  0x2e PF: > { %p342_p2 = scmp.ge.s32.totalorder %s472_s14, 2  ;;  %s239_s7 = sand.u32 1, %s452_s9  }
  0x2f   : > { %s240_s8 = scalar_lea.sflag [#allocation3], %s239_s7 }
  0x30   : > { %p339_p3 = pnand %p342_p2, %p540_p8 }
  0x32   : > { %447 = dma.done.wait (!%p339_p3), %s240_s8, 256  }
  0x33   : > { %449 = vsyncadd (!%p339_p3), %s240_s8, 4294967040  ;;  %s15_s14 = sadd.s32 1, %s472_s14   ;;  %s619_s9 = smov %s456_s10 }
  0x34   : > { %p12_p5 = scmp.ge.s32.totalorder %s15_s14, 4   ;;  %s620_s10 = smov %s460_s11 }
  0x35   : > { %s621_s11 = smov %s546_s22  ;;  %s622_s12 = smov %s468_s13 }
  0x36   : > { %s623_s13 = smov %s625_s17  ;;  %14 = sbr.rel (!%p12_p5) target bundleno = 4 (0x4), region = 66 }
  0x3d   :  { %245 = vsyncpa [#allocation3], 1 }
  0x3e   :  { %247 = vsyncpa [#allocation3 + $0x1], 1 }

// kernel: mask_oneshot_forward.4
= control target key start
LH: loop header
LB: loop body
LE: loop exit
PB: predicated region body
PF: predicated region fallthrough
CT: control target
= control target key end

     0   :  { %vm22_vm0 = vcmask 130048   ;;  %v83_v31 = vmov 0.0   ;;  %s110_s0 = inlined_call_operand.vmem [shape: f32[16,16], index: 0, kind: input, shape index: {}]   ;;  %s111_s1 = inlined_call_operand.vmem [shape: f32[16,16], index: 1, kind: output, shape index: {}]  }
   0x1   :  { %v8_v0 = vld [vmem:[%s110_s0] sm:$0xff]  ;;  %v9_v1 = vld [vmem:[%s110_s0 + $0x8] sm:$0xff] }
   0x2   :  { %v10_v2 = vmul.f32 -5.0, %v8_v0  ;;  %v11_v3 = vmul.f32 -5.0, %v9_v1 }
   0x4   :  { %v12_v4 = vmul.f32 1.442695, %v10_v2  ;;  %v14_v5 = vmul.f32 1.442695, %v11_v3 }
   0x6   :  { %71 = vpow2.f32 %v12_v4 }
   0x7   :  { %73 = vpow2.f32 %v14_v5 }
  0x10   :  { %v72_v6 = vpop.eup %71 }
  0x11   :  { %v74_v7 = vpop.eup %73  ;;  %v16_v8 = vadd.f32 1.0, %v72_v6 }
  0x12   :  { %v17_v9 = vadd.f32 1.0, %v74_v7 }
  0x13   :  { %75 = vrcp.f32 %v16_v8 }
  0x14   :  { %77 = vrcp.f32 %v17_v9 }
  0x1d   :  { %v76_v10 = vpop.eup %75 }
  0x1e   :  { %v78_v11 = vpop.eup %77  ;;  %v23_v12 = vsel %vm22_vm0, %v76_v10, 0.0  ;;  %v51_v27 = vsub.f32 1.0, %v76_v10 }
  0x1f   :  { %v24_v13 = vsel %vm22_vm0, %v78_v11, 0.0  ;;  %v52_v29 = vsub.f32 1.0, %v78_v11 }
  0x20   :  { %v25_v14 = vadd.f32 %v24_v13, %v23_v12 }
  0x22   :  { %26 = vadd.xlane.f32.xlu0 %v25_v14 }
  0xaf   :  { %v27_v15 = vpop.xlane.xlu0 %26 }
  0xb0   :  { %v28_v16 = vrot.slane %v27_v15, 4 }
  0xb2   :  { %v29_v17 = vadd.f32 %v28_v16, %v27_v15 }
  0xb4   :  { %v30_v18 = vrot.slane %v29_v17, 2 }
  0xb6   :  { %v31_v19 = vadd.f32 %v30_v18, %v29_v17 }
  0xb8   :  { %v32_v20 = vrot.slane %v31_v19, 1 }
  0xba   :  { %v33_v21 = vadd.f32 %v32_v20, %v31_v19 }
  0xbc   :  { %68 = vpush %v33_v21 }
  0xed   :  { %s69_s0 = spop %68 }
  0xee   :  { %v35_v22 = vstv %s69_s0 }
  0xef   :  { %v37_v23 = vmul.f32 0.00390625, %v35_v22 }
  0xf1   :  { %79 = vrcp.f32 %v37_v23  ;;  %v40_v24 = vsub.f32 1.0, %v37_v23 }
  0xf3   :  { %81 = vrcp.f32 %v40_v24 }
  0xfb   :  { %v80_v25 = vpop.eup %79 }
  0xfc   :  { %v39_v26 = vmul.f32 0.125, %v80_v25 }
  0xfd   :  { %v82_v28 = vpop.eup %81 }
  0xfe   :  { %v42_v30 = vmul.f32 0.875, %v82_v28  ;;  %vm43_vm1 = vcmp.lt.f32.partialorder %v39_v26, 1.0  ;;  %v46_v33 = vmul.f32 %v76_v10, %v39_v26  ;;  %v47_v35 = vmul.f32 %v78_v11, %v39_v26 }
  0xff   :  { %v67_v32 = vsel %vm43_vm1, 1.0, %v83_v31 }
 0x100   :  { %v53_v34 = vmul.f32 %v51_v27, %v42_v30  ;;  %v54_v36 = vmul.f32 %v52_v29, %v42_v30  ;;  %v50_v37 = vsub.f32 1.0, %v67_v32  ;;  %v48_v40 = vmul.f32 %v67_v32, %v46_v33 }
 0x101   :  { %v49_v42 = vmul.f32 %v67_v32, %v47_v35 }
 0x102   :  { %v55_v38 = vsub.f32 1.0, %v53_v34  ;;  %v56_v39 = vsub.f32 1.0, %v54_v36 }
 0x104   :  { %v57_v41 = vmul.f32 %v55_v38, %v50_v37  ;;  %v58_v43 = vmul.f32 %v56_v39, %v50_v37 }
 0x106   :  { %v59_v44 = vadd.f32 %v57_v41, %v48_v40  ;;  %v60_v45 = vadd.f32 %v58_v43, %v49_v42 }
 0x108   :  { %61 = vst.msk [vmem:[%s111_s1] sm:$0xff] %vm22_vm0, %v59_v44  ;;  %62 = vst.msk [vmem:[%s111_s1 + $0x8] sm:$0xff] %vm22_vm0, %v60_v45 }

// kernel: mask_oneshot_forward.6
= control target key start
LH: loop header
LB: loop body
LE: loop exit
PB: predicated region body
PF: predicated region fallthrough
CT: control target
= control target key end

     0   :  { %s418_s9 = smov 0   ;;  %s420_s10 = smov 0   ;;  %s451_s0 = inlined_call_operand.vmem [shape: f32[2,2,16,16], index: 0, kind: input, shape index: {}]   ;;  %s452_s1 = inlined_call_operand.vmem [shape: f32[2,1,16,16], index: 1, kind: input, shape index: {}]   ;;  %s453_s2 = inlined_call_operand.vmem [shape: f32[2,2,16,16], index: 2, kind: output, shape index: {}]  }
   0x1   :  { %s422_s11 = smov 0  }
   0x2 LB: > { %s24_s12 = sadd.s32 1, %s397_s10  ;;  %p343_p0 = scmp.ge.s32.totalorder %s401_s11, 1  ;;  %s401_s11 = sphi %s422_s11, %s12_s11   ;;  %s397_s10 = sphi %s420_s10, %s455_s10   ;;  %s393_s9 = sphi %s418_s9, %s454_s9  }
   0x3   : > { %p26_p1 = scmp.ge.s32.totalorder %s24_s12, 2  ;;  %p150_p2 = scmp.lt.s32.totalorder %s401_s11, 3 }
   0x5   : > { %s457_s12 = smov (%p26_p1, %s24_s12), 0  ;;  %p151_p3 = pnand %p343_p0, %p150_p2 }
   0x6   : > { %p190_p4 = scmp.lt.s32.totalorder (!%p151_p3), %s393_s9, 1  ;;  %vm229_vm0 = vcmask (!%p151_p3), 130048  }
   0x7   : > { %154 = sbr.rel (%p151_p3) target bundleno = 23 (0x17), region = 28 }
   0xe   : > { %s459_s9 = smov (!%p190_p4, %s393_s9), 1 }
   0xf   : > { %s352_s13 = sshll.u32 %s459_s9, 5  ;;  %s353_s14 = sshll.u32 %s459_s9, 4 }
  0x10   : > { %s197_s17 = scalar_lea.vmem %s451_s0, %s352_s13  ;;  %s207_s20 = scalar_lea.vmem %s452_s1, %s353_s14 }
  0x11   : > { %s217_s23 = scalar_lea.vmem %s453_s2, %s352_s13  ;;  %v219_v0 = vld [vmem:[%s197_s17] sm:$0xff]  ;;  %v220_v2 = vld [vmem:[%s197_s17 + $0x8] sm:$0xff]  ;;  %v221_v5 = vld [vmem:[%s197_s17 + $0x10] sm:$0xff] }
  0x12   : > { %v223_v1 = vld [vmem:[%s207_s20] sm:$0xff]  ;;  %v224_v4 = vld [vmem:[%s207_s20 + $0x8] sm:$0xff]  ;;  %v222_v6 = vld [vmem:[%s197_s17 + $0x18] sm:$0xff] }
  0x13   : > { %v225_v3 = vmul.f32 %v223_v1, %v219_v0  ;;  %v226_v7 = vmul.f32 %v224_v4, %v220_v2  ;;  %v227_v8 = vmul.f32 %v223_v1, %v221_v5  ;;  %v228_v9 = vmul.f32 %v224_v4, %v222_v6 }
  0x15   : > { %230 = vst.msk [vmem:[%s217_s23] sm:$0xff] %vm229_vm0, %v225_v3  ;;  %231 = vst.msk [vmem:[%s217_s23 + $0x8] sm:$0xff] %vm229_vm0, %v226_v7 }
  0x16   : > { %232 = vst.msk [vmem:[%s217_s23 + $0x10] sm:$0xff] %vm229_vm0, %v227_v8  ;;  %233 = vst.msk [vmem:[%s217_s23 + $0x18] sm:$0xff] %vm229_vm0, %v228_v9 }
  0x17 PF: > { %s12_s11 = sadd.s32 1, %s401_s11   ;;  %s454_s9 = smov %s397_s10 }
  0x18   : > { %p9_p5 = scmp.ge.s32.totalorder %s12_s11, 4   ;;  %s455_s10 = smov %s457_s12 }
  0x1a   :  { %11 = sbr.rel (!%p9_p5) target bundleno = 2 (0x2), region = 61 }

// kernel: mask_oneshot_forward.7
= control target key start
LH: loop header
LB: loop body
LE: loop exit
PB: predicated region body
PF: predicated region fallthrough
CT: control target
= control target key end

     0   :  { %6 = vsyncpa [#allocation3], 0  ;;  %s552_s0 = inlined_call_operand.vmem [shape: f32[2,2,16,16], index: 0, kind: input, shape index: {}]   ;;  %s553_s1 = inlined_call_operand.hbm [shape: f32[2,1,16,16], index: 1, kind: output, shape index: {}]  }
   0x1   :  { %8 = vsyncpa [#allocation3 + $0x1], 0  ;;  %s437_s6 = smov 0   ;;  %s439_s7 = smov 0  }
   0x2   :  { %s441_s8 = smov 0   ;;  %s443_s9 = smov 0  }
   0x3   :  { %s445_s10 = smov 0   ;;  %s447_s11 = smov 0  }
   0x4 LB: > { %s268_s12 = sadd.s32 4294967295, %s422_s11   ;;  %s269_s13 = sadd.s32 4294967294, %s422_s11   ;;  %s422_s11 = sphi %s447_s11, %s14_s11   ;;  %s418_s10 = sphi %s445_s10, %s560_s10   ;;  %s414_s9 = sphi %s443_s9, %s559_s9   ;;  %s410_s8 = sphi %s441_s8, %s558_s8   ;;  %s406_s7 = sphi %s439_s7, %s557_s7   ;;  %s402_s6 = sphi %s437_s6, %s556_s6  }
   0x5   : > { %s26_s14 = sadd.s32 1, %s418_s10  ;;  %s63_s15 = sadd.s32 1, %s410_s8 }
   0x6   : > { %p28_p0 = scmp.ge.s32.totalorder %s26_s14, 2  ;;  %p73_p1 = scmp.ne.s32.totalorder %s410_s8, %s406_s7 }
   0x7   : > { %p74_p2 = scmp.eq.s32.totalorder %s268_s12, 1  ;;  %p79_p3 = scmp.ne.s32.totalorder %s406_s7, %s402_s6 }
   0x8   : > { %s562_s14 = smov (%p28_p0, %s26_s14), 0  ;;  %p80_p5 = scmp.eq.s32.totalorder %s269_s13, 1 }
   0x9   : > { %p477_p4 = por %p74_p2, %p73_p1  ;;  %s58_s17 = ssub.s32 %s418_s10, %s562_s14 }
   0xa   : > { %p272_p6 = scmp.ge.s32.totalorder %s422_s11, 1  ;;  %p61_p7 = scmp.eq.s32.totalorder %s58_s17, 0 }
   0xb   : > { %p484_p8 = por %p80_p5, %p79_p3  ;;  %p111_p9 = scmp.lt.s32.totalorder %s422_s11, 3 }
   0xc   : > { %s490_s19 = scalar_select %p61_p7, %s410_s8, %s63_s15  }
   0xd   : > { %p112_p10 = pnand %p272_p6, %p111_p9 }
   0xe   : > { %p136_p11 = scmp.lt.s32.totalorder (!%p112_p10), %s414_s9, 1  ;;  %s132_s25 = sand.u32 (!%p112_p10), 1, %s406_s7   ;;  %vm170_vm3 = vcmask (!%p112_p10), 130048  }
   0xf   : > { %115 = sbr.rel (%p112_p10) target bundleno = 62 (0x3e), region = 24  ;;  %s273_s26 = sshll.u32 (!%p112_p10), %s132_s25, 4 }
  0x10   : > { %s134_s27 = scalar_lea.vmem (!%p112_p10), [#allocation2], %s273_s26  ;;  %s282_s29 = sshll.u32 (!%p112_p10), %s414_s9, 8 }
  0x11   : > { %s189_s28 = sshll.u32 (!%p112_p10), %s134_s27, 4  ;;  %s504_s3 = scalar_lea.hbm (!%p112_p10), %s553_s1, %s282_s29  ;;  %s499_s28 = int_to_ptr.vmem [resolvable:$true] %s189_s28 }
  0x12   : > { %s506_s4 = scalar_lea.sflag (!%p112_p10), [#allocation3], %s132_s25  ;;  %s344_s5 = scalar_lea.vmem (!%p112_p10), %s499_s28, 256 }
  0x13   : > { %p345_p12 = scmp.ne.s32.totalorder (!%p112_p10), %s499_s28, %s344_s5 }
  0x15   : > { %p346_p13 = pnand (!%p112_p10), %p345_p12, %p477_p4 }
  0x16   : > { %s137_s20 = scalar_select %p136_p11, %s414_s9, 1 }
  0x17   : > { %p347_p0 = pneg %p346_p13  ;;  %s424_s9 = smov [#allocation2]  }
  0x18   : > { %s281_s21 = sshll.u32 %s137_s20, 5  ;;  %s348_s12 = sshll.u32 %s424_s9, 4  ;;  %s349_s12 = int_to_ptr.vmem [resolvable:$false] %s348_s12 }
  0x19   : > { %s143_s24 = scalar_lea.vmem %s552_s0, %s281_s21  ;;  %s350_s13 = scalar_lea.vmem %s349_s12, 512 }
  0x1a   : > { %v146_v0 = vld [vmem:[%s143_s24] sm:$0xff]  ;;  %v148_v1 = vld [vmem:[%s143_s24 + $0x10] sm:$0xff]  ;;  %v147_v2 = vld [vmem:[%s143_s24 + $0x8] sm:$0xff]  ;;  %p351_p1 = scmp.lt.s32.totalorder %s499_s28, %s349_s12  ;;  %p352_p2 = scmp.lt.s32.totalorder %s350_s13, %s344_s5 }
  0x1b   : > { %v150_v3 = vmul.f32 %v146_v0, %v146_v0  ;;  %v152_v4 = vmul.f32 %v148_v1, %v148_v1  ;;  %v149_v5 = vld [vmem:[%s143_s24 + $0x18] sm:$0xff]  ;;  %v151_v6 = vmul.f32 %v147_v2, %v147_v2 }
  0x1c   : > { %v153_v7 = vmul.f32 %v149_v5, %v149_v5  ;;  %p353_p3 = por %p352_p2, %p351_p1 }
  0x1d   : > { %v154_v8 = vadd.f32 %v152_v4, %v150_v3 }
  0x1e   : > { %v155_v9 = vadd.f32 %v153_v7, %v151_v6  ;;  %p354_p5 = pnand %p353_p3, %p347_p0 }
  0x1f   : > { %340 = vrsqrt.f32 %v154_v8  ;;  %vm158_vm0 = vcmp.eq.f32.partialorder %v154_v8, inf  ;;  %v161_v11 = vand.u32 2147483648, %v154_v8  ;;  %vm160_vm1 = vcmp.eq.f32.partialorder %v154_v8, 0.0 }
  0x20   : > { %342 = vrsqrt.f32 %v155_v9  ;;  %vm165_vm2 = vcmp.eq.f32.partialorder %v155_v9, inf  ;;  %v168_v14 = vand.u32 2147483648, %v155_v9  ;;  %vm167_vm4 = vcmp.eq.f32.partialorder %v155_v9, 0.0 }
  0x29   : > { %v341_v10 = vpop.eup %340 }
  0x2a   : > { %v343_v12 = vpop.eup %342  ;;  %v157_v13 = vmul.f32 %v341_v10, %v154_v8 }
  0x2b   : > { %v164_v15 = vmul.f32 %v343_v12, %v155_v9 }
  0x2c   : > { %v159_v16 = vsel %vm158_vm0, %v154_v8, %v157_v13 }
  0x2d   : > { %v162_v17 = vsel %vm160_vm1, %v161_v11, %v159_v16  ;;  %v166_v18 = vsel %vm165_vm2, %v155_v9, %v164_v15 }
  0x2e   : > { %171 = vst.msk [vmem:[%s134_s27] sm:$0xff] %vm170_vm3, %v162_v17  ;;  %v169_v19 = vsel %vm167_vm4, %v168_v14, %v166_v18 }
  0x2f   : > { %172 = vst.msk [vmem:[%s134_s27 + $0x8] sm:$0xff] %vm170_vm3, %v169_v19 }
  0x30   : > { %357 = shalt.err (!%p354_p5)
}
  0x31   : > { %s358_s15 = scalar_lea.hbm %s504_s3, 256  ;;  %s362_s21 = scalar_lea.hbm %s553_s1, 512 }
  0x32   : > { %p359_p6 = scmp.ne.s32.totalorder %s504_s3, %s358_s15  ;;  %p363_p10 = scmp.lt.u32.totalorder %s504_s3, %s553_s1 }
  0x33   : > { %p364_p11 = scmp.lt.u32.totalorder %s362_s21, %s358_s15  ;;  %p366_p13 = scmp.lt.u32.totalorder %s358_s15, %s504_s3 }
  0x34   : > { %p360_p7 = pnand %p359_p6, %p477_p4 }
  0x35   : > { %p365_p12 = por %p364_p11, %p363_p10 }
  0x36   : > { %p361_p9 = pneg %p360_p7 }
  0x37   : > { %p367_p0 = por %p366_p13, %p365_p12 }
  0x39   : > { %p368_p1 = pnand %p367_p0, %p361_p9 }
  0x3b   : > { %371 = shalt.err (!%p368_p1)
}
  0x3c   : > { %s425_s24 = smov 128   ;;  %s426_s25 = smov 8  }
  0x3d   : > { %283 = dma.vmem_to_hbm [thread:$0]  (%p477_p4), %s499_s28, 256, %s504_s3, %s506_s4, %s425_s24, %s425_s24, %s426_s25  }
  0x3e PF: > { %p289_p2 = scmp.ge.s32.totalorder %s422_s11, 2  ;;  %s204_s26 = sand.u32 1, %s402_s6  }
  0x3f   : > { %s205_s27 = scalar_lea.sflag [#allocation3], %s204_s26 }
  0x40   : > { %p286_p3 = pnand %p289_p2, %p484_p8 }
  0x42   : > { %397 = dma.done.wait (!%p286_p3), %s205_s27, 256  }
  0x43   : > { %399 = vsyncadd (!%p286_p3), %s205_s27, 4294967040  ;;  %s14_s11 = sadd.s32 1, %s422_s11   ;;  %s556_s6 = smov %s406_s7 }
  0x44   : > { %p11_p5 = scmp.ge.s32.totalorder %s14_s11, 4   ;;  %s557_s7 = smov %s410_s8 }
  0x45   : > { %s558_s8 = smov %s490_s19  ;;  %s559_s9 = smov %s418_s10 }
  0x46   : > { %s560_s10 = smov %s562_s14  ;;  %13 = sbr.rel (!%p11_p5) target bundleno = 4 (0x4), region = 59 }
  0x4d   :  { %210 = vsyncpa [#allocation3], 1 }
  0x4e   :  { %212 = vsyncpa [#allocation3 + $0x1], 1 }

</bundles_post_ra>
